<compile_context>
chip_gen: v7x
topology: tpu7x:2x2x1
jax: 0.10.0
libtpu: 0.0.40
codegen_flags: <defaults>
</compile_context>

<pallas_src>
import functools
import jax
import jax.numpy as jnp
from jax.experimental import pallas as pl
from jax.experimental.pallas import tpu as pltpu

# ------------------------------ configuration -------------------------------
IN_CHANS = 3
IN_FRAMES = 1
PATCH = 4
EMBED_DIM = 96
FLATTEN = True            # exercise the flatten + LayerNorm path of forward()
LN_EPS = 1e-6             # fuxi.py: norm_layer = partial(nn.LayerNorm, eps=1e-6)

B, H, W = 2, 16, 16
K = IN_CHANS * IN_FRAMES * PATCH * PATCH          # 48 (contraction dim)


# =============================== Pallas kernel ===============================

def _embed_kernel(p_ref, w_ref, b_ref, g_ref, beta_ref, o_ref, *, apply_norm):
    """patches @ W_flat + b, optionally fused with LayerNorm over embed_dim."""
    x = p_ref[...].astype(jnp.float32)                                  # (TM, K)
    y = jnp.dot(x, w_ref[...], preferred_element_type=jnp.float32)      # (TM, E)
    y = y + b_ref[...]
    if apply_norm:   # static (trace-time) branch: norm only on the flatten path
        mu = jnp.mean(y, axis=-1, keepdims=True)
        var = jnp.mean((y - mu) ** 2, axis=-1, keepdims=True)
        y = (y - mu) * jax.lax.rsqrt(var + LN_EPS)
        y = y * g_ref[...] + beta_ref[...]
    o_ref[...] = y.astype(o_ref.dtype)


# ============================ pallas_call wrapper ============================

def cube_embed_pallas(patches, w_flat, bias, gamma, beta, *, apply_norm):
    M, Kc = patches.shape
    E = w_flat.shape[1]
    # One grid step at small sizes; tile rows only when the patch count is big.
    TM = M if M <= 512 else 512
    pad = (-M) % TM
    if pad:
        patches = jnp.pad(patches, ((0, pad), (0, 0)))
    Mp = patches.shape[0]

    kernel = functools.partial(_embed_kernel, apply_norm=apply_norm)
    out = pl.pallas_call(
        kernel,
        out_shape=jax.ShapeDtypeStruct((Mp, E), patches.dtype),
        grid=(Mp // TM,),
        in_specs=[
            pl.BlockSpec((TM, Kc), lambda i: (i, 0)),     # patch rows (lane-dense)
            pl.BlockSpec((Kc, E), lambda i: (0, 0)),      # flattened conv weight
            pl.BlockSpec((1, E), lambda i: (0, 0)),       # conv bias
            pl.BlockSpec((1, E), lambda i: (0, 0)),       # LN gamma
            pl.BlockSpec((1, E), lambda i: (0, 0)),       # LN beta
        ],
        out_specs=pl.BlockSpec((TM, E), lambda i: (i, 0)),
        compiler_params=pltpu.CompilerParams(
            dimension_semantics=("parallel",)),           # v7x dual-TC when M is big
    )(patches, w_flat, bias, gamma, beta)
    return out[:M] if pad else out


# ================================= glue (JAX) ================================

def init_params(key):
    ks = jax.random.split(key, 2)
    s = 0.02
    # torch Conv2d weight layout: (out_ch, in_ch, kh, kw)
    w = jax.random.normal(
        ks[0], (EMBED_DIM, IN_CHANS * IN_FRAMES, PATCH, PATCH), jnp.float32) * s
    b = jax.random.normal(ks[1], (EMBED_DIM,), jnp.float32) * s
    return {
        'w_conv': w,
        'w_flat': w.reshape(EMBED_DIM, -1).T,             # (K, E), flattened (c, kh, kw)
        'b': b.reshape(1, EMBED_DIM),
        'gamma': jnp.ones((1, EMBED_DIM), jnp.float32),   # LayerNorm affine defaults
        'beta': jnp.zeros((1, EMBED_DIM), jnp.float32),
    }


def cube_embed_forward(x, p, *, flatten=FLATTEN, use_norm=True):
    """CubeEmbed.forward:  (optional 5-D merge) -> proj -> (flatten -> norm)."""
    if x.ndim == 5:                                        # 'n t c h w -> n (t c) h w'
        n, t, c, h, w = x.shape
        x = x.reshape(n, t * c, h, w)
    n, c, h, w = x.shape
    hp, wp = h // PATCH, w // PATCH
    # Non-overlapping patch extraction (layout plumbing only, no compute):
    # (n, c, h, w) -> (n*hp*wp, c*P*P), row order matches 'n (h w) c' flatten.
    xp = x.reshape(n, c, hp, PATCH, wp, PATCH)
    xp = xp.transpose(0, 2, 4, 1, 3, 5).reshape(n * hp * wp, c * PATCH * PATCH)

    y = cube_embed_pallas(xp, p['w_flat'], p['b'], p['gamma'], p['beta'],
                          apply_norm=(flatten and use_norm))

    if flatten:
        return y.reshape(n, hp * wp, EMBED_DIM)            # 'n c h w -> n (h w) c'
    return y.reshape(n, hp, wp, EMBED_DIM).transpose(0, 3, 1, 2)   # NCHW


# --------------------------- pure-JAX reference check -------------------------

def reference_forward(x, p, *, flatten=FLATTEN, use_norm=True):
    if x.ndim == 5:
        n, t, c, h, w = x.shape
        x = x.reshape(n, t * c, h, w)
    y = jax.lax.conv_general_dilated(
        x, p['w_conv'], window_strides=(PATCH, PATCH), padding='VALID',
        dimension_numbers=('NCHW', 'OIHW', 'NCHW'))
    y = y + p['b'].reshape(1, EMBED_DIM, 1, 1)
    if flatten:
        n2, e, hp, wp = y.shape
        y = y.transpose(0, 2, 3, 1).reshape(n2, hp * wp, e)
        if use_norm:
            mu = jnp.mean(y, -1, keepdims=True)
            var = jnp.mean((y - mu) ** 2, -1, keepdims=True)
            y = (y - mu) / jnp.sqrt(var + LN_EPS) * p['gamma'].reshape(-1) \
                + p['beta'].reshape(-1)
    return y


# ==================================== main ====================================

if __name__ == "__main__":
    key = jax.random.PRNGKey(0)
    kx, kp = jax.random.split(key)
    params = init_params(kp)
    x = jax.random.normal(kx, (B, IN_CHANS * IN_FRAMES, H, W), jnp.float32)

    # flatten=True path: proj + 'n c h w -> n (h w) c' + LayerNorm(eps=1e-6)
    out = jax.block_until_ready(cube_embed_forward(x, params, flatten=True))
    ref = jax.block_until_ready(reference_forward(x, params, flatten=True))
    assert out.shape == (B, (H // PATCH) * (W // PATCH), EMBED_DIM)
    err1 = float(jnp.max(jnp.abs(out - ref)))
    assert err1 < 2e-3, f"flatten path max abs err {err1}"

    # flatten=False path: proj only (norm is skipped, NCHW output)
    out2 = jax.block_until_ready(cube_embed_forward(x, params, flatten=False))
    ref2 = jax.block_until_ready(reference_forward(x, params, flatten=False))
    assert out2.shape == (B, EMBED_DIM, H // PATCH, W // PATCH)
    err2 = float(jnp.max(jnp.abs(out2 - ref2)))
    assert err2 < 2e-3, f"no-flatten path max abs err {err2}"

    # 5-D input path: 'n t c h w -> n (t c) h w' handled in the wrapper
    x5 = x.reshape(B, IN_FRAMES, IN_CHANS, H, W)
    out5 = jax.block_until_ready(cube_embed_forward(x5, params, flatten=True))
    err3 = float(jnp.max(jnp.abs(out5 - ref)))
    assert err3 < 2e-3, f"5-D path max abs err {err3}"

    print("KERNEL_OK")
</pallas_src>

<mosaic_0001>
module attributes {stable_mosaic.version = 11 : i64} {
  func.func @_embed_kernel(%arg0: i32, %arg1: memref<32x48xf32, #tpu.memory_space<vmem>>, %arg2: memref<48x96xf32, #tpu.memory_space<vmem>>, %arg3: memref<1x96xf32, #tpu.memory_space<vmem>>, %arg4: memref<1x96xf32, #tpu.memory_space<vmem>>, %arg5: memref<1x96xf32, #tpu.memory_space<vmem>>, %arg6: memref<32x96xf32, #tpu.memory_space<vmem>>) attributes {dimension_semantics = [#tpu.dimension_semantics<parallel>], iteration_bounds = array<i64: 1>, scalar_prefetch = 0 : i64, scratch_operands = 0 : i64, tpu.core_type = #tpu.core_type<tc>, window_params = [{transform_indices = @transform_0, window_bounds = array<i64: 32, 48>}, {pipeline_mode = #tpu.pipeline_mode<synchronous>, transform_indices = @transform_1, window_bounds = array<i64: 48, 96>}, {pipeline_mode = #tpu.pipeline_mode<synchronous>, transform_indices = @transform_2, window_bounds = array<i64: 1, 96>}, {pipeline_mode = #tpu.pipeline_mode<synchronous>, transform_indices = @transform_3, window_bounds = array<i64: 1, 96>}, {pipeline_mode = #tpu.pipeline_mode<synchronous>, transform_indices = @transform_4, window_bounds = array<i64: 1, 96>}, {transform_indices = @transform_5, window_bounds = array<i64: 32, 96>}]} {
    %c0 = arith.constant 0 : index
    %c0_0 = arith.constant 0 : index
    %0 = vector.load %arg1[%c0, %c0_0] : memref<32x48xf32, #tpu.memory_space<vmem>>, vector<32x48xf32>
    %c0_1 = arith.constant 0 : index
    %c0_2 = arith.constant 0 : index
    %1 = vector.load %arg2[%c0_1, %c0_2] : memref<48x96xf32, #tpu.memory_space<vmem>>, vector<48x96xf32>
    %cst = arith.constant dense<0.000000e+00> : vector<32x96xf32>
    %2 = tpu.matmul %0, %1, %cst {dimension_numbers = #tpu.dot_dimension_numbers<[1], [0], [0], [1], [0, 0, 1, 1], [], []>} : vector<32x48xf32>, vector<48x96xf32>, vector<32x96xf32> -> vector<32x96xf32>
    %c0_3 = arith.constant 0 : index
    %c0_4 = arith.constant 0 : index
    %3 = vector.load %arg3[%c0_3, %c0_4] : memref<1x96xf32, #tpu.memory_space<vmem>>, vector<1x96xf32>
    %4 = vector.broadcast %3 : vector<1x96xf32> to vector<32x96xf32>
    %5 = arith.addf %2, %4 : vector<32x96xf32>
    %cst_5 = arith.constant dense<0.000000e+00> : vector<32xf32>
    %6 = vector.multi_reduction <add>, %5, %cst_5 [1] : vector<32x96xf32> to vector<32xf32>
    %7 = vector.shape_cast %6 : vector<32xf32> to vector<32x1xf32>
    %cst_6 = arith.constant 9.600000e+01 : f32
    %8 = vector.broadcast %cst_6 : f32 to vector<32x1xf32>
    %9 = arith.divf %7, %8 : vector<32x1xf32>
    %10 = vector.broadcast %9 : vector<32x1xf32> to vector<32x96xf32>
    %11 = arith.subf %5, %10 : vector<32x96xf32>
    %12 = arith.mulf %11, %11 : vector<32x96xf32>
    %cst_7 = arith.constant dense<0.000000e+00> : vector<32xf32>
    %13 = vector.multi_reduction <add>, %12, %cst_7 [1] : vector<32x96xf32> to vector<32xf32>
    %14 = vector.shape_cast %13 : vector<32xf32> to vector<32x1xf32>
    %cst_8 = arith.constant 9.600000e+01 : f32
    %15 = vector.broadcast %cst_8 : f32 to vector<32x1xf32>
    %16 = arith.divf %14, %15 : vector<32x1xf32>
    %17 = vector.broadcast %9 : vector<32x1xf32> to vector<32x96xf32>
    %18 = arith.subf %5, %17 : vector<32x96xf32>
    %cst_9 = arith.constant 9.99999997E-7 : f32
    %19 = vector.broadcast %cst_9 : f32 to vector<32x1xf32>
    %20 = arith.addf %16, %19 : vector<32x1xf32>
    %21 = math.rsqrt %20 : vector<32x1xf32>
    %22 = vector.broadcast %21 : vector<32x1xf32> to vector<32x96xf32>
    %23 = arith.mulf %18, %22 : vector<32x96xf32>
    %c0_10 = arith.constant 0 : index
    %c0_11 = arith.constant 0 : index
    %24 = vector.load %arg4[%c0_10, %c0_11] : memref<1x96xf32, #tpu.memory_space<vmem>>, vector<1x96xf32>
    %25 = vector.broadcast %24 : vector<1x96xf32> to vector<32x96xf32>
    %26 = arith.mulf %23, %25 : vector<32x96xf32>
    %c0_12 = arith.constant 0 : index
    %c0_13 = arith.constant 0 : index
    %27 = vector.load %arg5[%c0_12, %c0_13] : memref<1x96xf32, #tpu.memory_space<vmem>>, vector<1x96xf32>
    %28 = vector.broadcast %27 : vector<1x96xf32> to vector<32x96xf32>
    %29 = arith.addf %26, %28 : vector<32x96xf32>
    %c0_14 = arith.constant 0 : index
    %c0_15 = arith.constant 0 : index
    %30 = vector.load %arg6[%c0_14, %c0_15] : memref<32x96xf32, #tpu.memory_space<vmem>>, vector<32x96xf32>
    tpu.vector_store %arg6[%c0_14, %c0_15], %29 {strides = array<i32>} : memref<32x96xf32, #tpu.memory_space<vmem>>, vector<32x96xf32>,
    return
  }
  func.func @transform_0(%arg0: i32) -> (i32, i32) {
    %c0_i32 = arith.constant 0 : i32
    %c0_i32_0 = arith.constant 0 : i32
    return %arg0, %c0_i32 : i32, i32
  }
  func.func @transform_1(%arg0: i32) -> (i32, i32) {
    %c0_i32 = arith.constant 0 : i32
    %c0_i32_0 = arith.constant 0 : i32
    %c0_i32_1 = arith.constant 0 : i32
    return %c0_i32, %c0_i32_0 : i32, i32
  }
  func.func @transform_2(%arg0: i32) -> (i32, i32) {
    %c0_i32 = arith.constant 0 : i32
    %c0_i32_0 = arith.constant 0 : i32
    %c0_i32_1 = arith.constant 0 : i32
    return %c0_i32, %c0_i32_0 : i32, i32
  }
  func.func @transform_3(%arg0: i32) -> (i32, i32) {
    %c0_i32 = arith.constant 0 : i32
    %c0_i32_0 = arith.constant 0 : i32
    %c0_i32_1 = arith.constant 0 : i32
    return %c0_i32, %c0_i32_0 : i32, i32
  }
  func.func @transform_4(%arg0: i32) -> (i32, i32) {
    %c0_i32 = arith.constant 0 : i32
    %c0_i32_0 = arith.constant 0 : i32
    %c0_i32_1 = arith.constant 0 : i32
    return %c0_i32, %c0_i32_0 : i32, i32
  }
  func.func @transform_5(%arg0: i32) -> (i32, i32) {
    %c0_i32 = arith.constant 0 : i32
    %c0_i32_0 = arith.constant 0 : i32
    return %arg0, %c0_i32 : i32, i32
  }
}

</mosaic_0001>

<bundles_post_ra>
// kernel: tpu_custom_call.1
= control target key start
LH: loop header
LB: loop body
LE: loop exit
PB: predicated region body
PF: predicated region fallthrough
CT: control target
= control target key end

     0   :  { %10 = vsyncpa [#allocation3], 0  ;;  %s505_s0 = inlined_call_operand.hbm [shape: f32[32,48], index: 0, kind: input, shape index: {}]   ;;  %s506_s1 = inlined_call_operand.hbm [shape: f32[48,96], index: 1, kind: input, shape index: {}]   ;;  %s507_s2 = inlined_call_operand.vmem [shape: f32[1,96], index: 2, kind: input, shape index: {}]   ;;  %s508_s3 = inlined_call_operand.vmem [shape: f32[1,96], index: 3, kind: input, shape index: {}]   ;;  %s509_s4 = inlined_call_operand.vmem [shape: f32[1,96], index: 4, kind: input, shape index: {}]   ;;  %s510_s5 = inlined_call_operand.hbm [shape: f32[32,96], index: 5, kind: output, shape index: {}]  }
   0x1   :  { %11 = vsyncpa [#allocation6], 0 }
   0x2   :  { %12 = vsyncpa [#allocation4], 0  ;;  %s400_s18 = smov [#allocation2]   ;;  %s328_s22 = scalar_lea.hbm %s505_s0, 512 }
   0x3   :  { %s18_s19 = sshll.u32 %s400_s18, 4  ;;  %p329_p0 = scmp.ne.s32.totalorder %s505_s0, %s328_s22  ;;  %s19_s19 = int_to_ptr.vmem [resolvable:$true] %s18_s19 }
   0x4   :  { %p332_p1 = scmp.lt.u32.totalorder %s328_s22, %s505_s0 }
   0x6   :  { %p334_p2 = pnand %p332_p1, %p329_p0 }
   0x8   :  { %337 = shalt.err (!%p334_p2)
}
   0x9   :  { %s338_s27 = scalar_lea.vmem %s19_s19, 512  ;;  %p343_p4 = scmp.lt.s32.totalorder %s19_s19, %s19_s19 }
   0xa   :  { %p339_p3 = scmp.ne.s32.totalorder %s19_s19, %s338_s27  ;;  %p344_p5 = scmp.lt.s32.totalorder %s338_s27, %s338_s27 }
   0xc   :  { %p345_p6 = por %p344_p5, %p343_p4 }
   0xe   :  { %p346_p7 = pnand %p345_p6, %p339_p3 }
  0x10   :  { %349 = shalt.err (!%p346_p7)
}
  0x11   :  { %s401_s28 = smov 128   ;;  %s402_s29 = smov 8  }
  0x12   :  { %24 = dma.hbm_to_vmem [thread:$0]  %s505_s0, 512, %s19_s19, [#allocation3], %s401_s28, %s401_s28, %s402_s29  }
  0x13   :  { %s403_s7 = smov [#allocation5]   ;;  %s350_s11 = scalar_lea.hbm %s506_s1, 768 }
  0x14   :  { %s30_s8 = sshll.u32 %s403_s7, 4  ;;  %p351_p8 = scmp.ne.s32.totalorder %s506_s1, %s350_s11  ;;  %s31_s8 = int_to_ptr.vmem [resolvable:$true] %s30_s8 }
  0x15   :  { %p354_p9 = scmp.lt.u32.totalorder %s350_s11, %s506_s1 }
  0x17   :  { %p356_p10 = pnand %p354_p9, %p351_p8 }
  0x19   :  { %359 = shalt.err (!%p356_p10)
}
  0x1a   :  { %s360_s16 = scalar_lea.vmem %s31_s8, 768  ;;  %p365_p12 = scmp.lt.s32.totalorder %s31_s8, %s31_s8 }
  0x1b   :  { %p361_p11 = scmp.ne.s32.totalorder %s31_s8, %s360_s16  ;;  %p366_p13 = scmp.lt.s32.totalorder %s360_s16, %s360_s16 }
  0x1d   :  { %p367_p0 = por %p366_p13, %p365_p12 }
  0x1f   :  { %p368_p1 = pnand %p367_p0, %p361_p11 }
  0x21   :  { %371 = shalt.err (!%p368_p1)
}
  0x22   :  { %36 = dma.hbm_to_vmem [thread:$0]  %s506_s1, 768, %s31_s8, [#allocation6], %s401_s28, %s401_s28, %s402_s29  }
  0x23   :  { %394 = dma.done.wait [#allocation3], 512  }
  0x24   :  { %395 = vsyncadd [#allocation3], 4294966784 }
  0x25   :  { %396 = dma.done.wait [#allocation6], 768  }
  0x26   :  { %397 = vsyncadd [#allocation6], 4294966528  ;;  %v53_v0 = vld [vmem:[#allocation5] sm:$0xff]  ;;  %v54_v1 = vld [vmem:[#allocation5 + $0x8] sm:$0xff]  ;;  %vm66_vm0 = vcmask 392192   ;;  %vm164_vm1 = vcmask 785408  }
  0x27   :  { %v55_v2 = vld [vmem:[#allocation5 + $0x10] sm:$0xff]  ;;  %v297_v3 = vpack.c.bf16 %v54_v1, %v53_v0  ;;  %v56_v4 = vld [vmem:[#allocation5 + $0x18] sm:$0xff]  ;;  %v57_v6 = vld [vmem:[#allocation5 + $0x20] sm:$0xff] }
  0x28   :  { %v301_v5 = vpack.c.bf16 %v56_v4, %v55_v2  ;;  %v58_v7 = vld [vmem:[#allocation5 + $0x28] sm:$0xff]  ;;  %v49_v8 = vld [vmem:[#allocation2] sm:$0xff]  ;;  %v51_v9 = vld [vmem:[#allocation2 + $0x10] sm:$0xff] }
  0x29   :  { %298 = vmatprep.subr.bf16.mxu0 %v297_v3  ;;  %309 = vmatprep.subr.bf16.mxu1 %v297_v3  ;;  %v305_v10 = vpack.c.bf16 %v58_v7, %v57_v6  ;;  %v50_v11 = vld [vmem:[#allocation2 + $0x8] sm:$0xff]  ;;  %v52_v12 = vld [vmem:[#allocation2 + $0x18] sm:$0xff]  ;;  %v262_v13 = vld [vmem:[%s507_s2] ss:$0 sm:$0xff] }
  0x2a   :  { %300 = vmatpush3.bf16.msra.mxu0 %v297_v3  ;;  %312 = vmatpush3.bf16.msra.mxu1 %v297_v3  ;;  %v267_v59 = vld [vmem:[%s508_s3] ss:$0 sm:$0xff]  ;;  %s404_s3 = smov [#allocation7]  }
  0x2b   :  { %302 = vmatprep.subr.bf16.mxu0 %v301_v5  ;;  %310 = vmatprep.subr.bf16.mxu1 %v301_v5  ;;  %v268_v61 = vld [vmem:[%s509_s4] ss:$0 sm:$0xff]  ;;  %s249_s22 = sshll.u32 %s404_s3, 4  ;;  %s250_s22 = int_to_ptr.vmem [resolvable:$true] %s249_s22 }
  0x2c   :  { %291 = vmatprep.mubr.msk.f32.mxu0 %vm66_vm0, %v49_v8  ;;  %294 = vmatprep.mubr.msk.f32.mxu1 %vm66_vm0, %v51_v9  ;;  %s372_s4 = scalar_lea.vmem %s250_s22, 512  ;;  %p377_p3 = scmp.lt.s32.totalorder %s250_s22, %s250_s22 }
  0x2d   :  { %p373_p2 = scmp.ne.s32.totalorder %s250_s22, %s372_s4  ;;  %p378_p4 = scmp.lt.s32.totalorder %s372_s4, %s372_s4 }
  0x2e   :  { %304 = vmatpush3.bf16.msra.mxu0 %v301_v5  ;;  %313 = vmatpush3.bf16.msra.mxu1 %v301_v5 }
  0x2f   :  { %306 = vmatprep.subr.bf16.mxu0 %v305_v10  ;;  %311 = vmatprep.subr.bf16.mxu1 %v305_v10  ;;  %p379_p5 = por %p378_p4, %p377_p3 }
  0x31   :  { %p380_p6 = pnand %p379_p5, %p373_p2 }
  0x32   :  { %308 = vmatpush3.bf16.msra.mxu0 %v305_v10  ;;  %314 = vmatpush3.bf16.msra.mxu1 %v305_v10 }
  0x35   :  { %292 = vmatmul.mubr.msk.f32.vlgmr.msra.gmra.mrb[0].mxu0 %vm66_vm0, %v50_v11  ;;  %295 = vmatmul.mubr.msk.f32.vlgmr.msra.gmra.mrb[0].mxu1 %vm66_vm0, %v52_v12 }
 0x108   :  { %v293_v14 = vpop.f32.mrb[0].mxu0  ;;  %v296_v15 = vpop.f32.mrb[0].mxu1 }
 0x109   :  { %v145_v16 = vpop.f32.mrb[1].mxu0  ;;  %v155_v17 = vpop.f32.mrb[1].mxu1  ;;  %v161_v18 = vadd.f32 %v296_v15, %v262_v13  ;;  %v151_v21 = vadd.f32 %v293_v14, %v262_v13 }
 0x10a   :  { %v146_v19 = vadd.f32 %v262_v13, %v145_v16  ;;  %v156_v20 = vadd.f32 %v262_v13, %v155_v17 }
 0x10b   :  { %v174_v24 = vsel %vm164_vm1, %v161_v18, 0.0  ;;  %v168_v25 = vsel %vm164_vm1, %v151_v21, 0.0 }
 0x10c   :  { %v171_v22 = vsel %vm164_vm1, %v156_v20, 0.0  ;;  %v165_v23 = vsel %vm164_vm1, %v146_v19, 0.0 }
 0x10d   :  { %172 = vadd.xlane.f32.xlu1 %v171_v22  ;;  %166 = vadd.xlane.f32.xlu0 %v165_v23 }
 0x111   :  { %175 = vadd.xlane.f32.xlu1 %v174_v24  ;;  %169 = vadd.xlane.f32.xlu0 %v168_v25 }
 0x19a   :  { %v173_v26 = vpop.xlane.xlu1 %172  ;;  %v167_v27 = vpop.xlane.xlu0 %166 }
 0x19b   :  { %v180_v28 = vmul.f32 0.010416667, %v173_v26  ;;  %v178_v29 = vmul.f32 0.010416667, %v167_v27 }
 0x19d   :  { %v184_v30 = vsub.f32 %v156_v20, %v180_v28  ;;  %v182_v31 = vsub.f32 %v146_v19, %v178_v29 }
 0x19e   :  { %v176_v32 = vpop.xlane.xlu1 %175  ;;  %v170_v33 = vpop.xlane.xlu0 %169 }
 0x19f   :  { %v181_v34 = vmul.f32 0.010416667, %v176_v32  ;;  %v179_v35 = vmul.f32 0.010416667, %v170_v33  ;;  %v186_v36 = vmul.f32 %v182_v31, %v182_v31  ;;  %v188_v40 = vmul.f32 %v184_v30, %v184_v30 }
 0x1a1   :  { %v185_v37 = vsub.f32 %v161_v18, %v181_v34  ;;  %v183_v38 = vsub.f32 %v151_v21, %v179_v35  ;;  %v190_v39 = vsel %vm164_vm1, %v186_v36, 0.0  ;;  %v196_v42 = vsel %vm164_vm1, %v188_v40, 0.0 }
 0x1a2   :  { %191 = vadd.xlane.f32.xlu0 %v190_v39 }
 0x1a3   :  { %v187_v41 = vmul.f32 %v183_v38, %v183_v38  ;;  %v189_v44 = vmul.f32 %v185_v37, %v185_v37 }
 0x1a5   :  { %v193_v43 = vsel %vm164_vm1, %v187_v41, 0.0  ;;  %v199_v45 = vsel %vm164_vm1, %v189_v44, 0.0 }
 0x1a6   :  { %197 = vadd.xlane.f32.xlu0 %v196_v42  ;;  %194 = vadd.xlane.f32.xlu1 %v193_v43 }
 0x1aa   :  { %200 = vadd.xlane.f32.xlu1 %v199_v45 }
 0x22f   :  { %v192_v46 = vpop.xlane.xlu0 %191 }
 0x230   :  { %v202_v47 = vmul.f32 0.010416667, %v192_v46 }
 0x232   :  { %v206_v48 = vadd.f32 1e-06, %v202_v47 }
 0x233   :  { %v195_v49 = vpop.xlane.xlu1 %194  ;;  %v198_v50 = vpop.xlane.xlu0 %197 }
 0x234   :  { %320 = vrsqrt.f32 %v206_v48  ;;  %v203_v51 = vmul.f32 0.010416667, %v195_v49  ;;  %v204_v52 = vmul.f32 0.010416667, %v198_v50 }
 0x236   :  { %v207_v53 = vadd.f32 1e-06, %v203_v51  ;;  %v208_v54 = vadd.f32 1e-06, %v204_v52 }
 0x237   :  { %v201_v55 = vpop.xlane.xlu1 %200 }
 0x238   :  { %322 = vrsqrt.f32 %v207_v53  ;;  %v205_v56 = vmul.f32 0.010416667, %v201_v55 }
 0x239   :  { %324 = vrsqrt.f32 %v208_v54 }
 0x23a   :  { %v209_v57 = vadd.f32 1e-06, %v205_v56 }
 0x23c   :  { %326 = vrsqrt.f32 %v209_v57 }
 0x23e   :  { %v321_v58 = vpop.eup %320 }
 0x23f   :  { %v214_v60 = vmul.f32 %v321_v58, %v182_v31 }
 0x241   :  { %v225_v62 = vmul.f32 %v267_v59, %v214_v60 }
 0x242   :  { %v323_v63 = vpop.eup %322 }
 0x243   :  { %v325_v0 = vpop.eup %324  ;;  %v215_v1 = vmul.f32 %v323_v63, %v183_v38  ;;  %v236_v2 = vadd.f32 %v268_v61, %v225_v62 }
 0x244   :  { %v216_v3 = vmul.f32 %v325_v0, %v184_v30 }
 0x245   :  { %v226_v4 = vmul.f32 %v267_v59, %v215_v1  ;;  %240 = vst.msk [vmem:[#allocation7] sm:$0xff] %vm164_vm1, %v236_v2 }
 0x246   :  { %v327_v5 = vpop.eup %326  ;;  %v227_v6 = vmul.f32 %v267_v59, %v216_v3 }
 0x247   :  { %v217_v7 = vmul.f32 %v327_v5, %v185_v37  ;;  %v237_v8 = vadd.f32 %v268_v61, %v226_v4 }
 0x248   :  { %v238_v9 = vadd.f32 %v268_v61, %v227_v6 }
 0x249   :  { %v228_v10 = vmul.f32 %v267_v59, %v217_v7  ;;  %241 = vst.msk [vmem:[#allocation7 + $0x8] sm:$0xff] %vm164_vm1, %v237_v8 }
 0x24a   :  { %242 = vst.msk [vmem:[#allocation7 + $0x10] sm:$0xff] %vm164_vm1, %v238_v9 }
 0x24b   :  { %v239_v11 = vadd.f32 %v268_v61, %v228_v10 }
 0x24d   :  { %243 = vst.msk [vmem:[#allocation7 + $0x18] sm:$0xff] %vm164_vm1, %v239_v11 }
 0x24e   :  { %383 = shalt.err (!%p380_p6)
}
 0x24f   :  { %s384_s25 = scalar_lea.hbm %s510_s5, 512 }
 0x250   :  { %p385_p7 = scmp.ne.s32.totalorder %s510_s5, %s384_s25  ;;  %p388_p8 = scmp.lt.u32.totalorder %s384_s25, %s510_s5 }
 0x252   :  { %p390_p9 = pnand %p388_p8, %p385_p7 }
 0x254   :  { %393 = shalt.err (!%p390_p9)
}
 0x255   :  { %255 = dma.vmem_to_hbm [thread:$0]  %s250_s22, 512, %s510_s5, [#allocation4], %s401_s28, %s401_s28, %s402_s29  }
 0x256   :  { %398 = dma.done.wait [#allocation4], 512  }
 0x257   :  { %399 = vsyncadd [#allocation4], 4294966784 }
 0x258   :  { %259 = vsyncpa [#allocation3], 1 }
 0x259   :  { %260 = vsyncpa [#allocation6], 1 }
 0x25a   :  { %261 = vsyncpa [#allocation4], 1 }

</bundles_post_ra>
